<compile_context>
chip_gen: v7x
topology: tpu7x:2x2x1
jax: 0.10.0
libtpu: 0.0.40
codegen_flags: <defaults>
</compile_context>

<pallas_src>
import functools

import jax
import jax.numpy as jnp
from jax.experimental import pallas as pl
from jax.experimental.pallas import tpu as pltpu


def _lstm_kernel(x_ref, p_ref, out_ref, *, B, T, Fp, H):
    # x_ref : (T*B, Fp)  time-major, feature-padded input
    # p_ref : (Fp + 3H + 3, 4H) packed parameter slab (gate order i,f,o,g):
    #         rows [0,Fp)         -> wih0_t (zero-padded rows)
    #         rows [Fp,Fp+H)      -> whh0_t
    #         rows [Fp+H,Fp+3H)   -> [wih1_t ; whh1_t]
    #         row  Fp+3H          -> cols[0:H]=wout row, col[H]=bout
    #         row  Fp+3H+1        -> b0 (= bih0+bhh0), row Fp+3H+2 -> b1 (= bih1+bhh1)
    # out_ref: (B, 1)
    f32 = jnp.float32
    G = 4 * H

    # --- static views into the single packed parameter slab (loaded once, hoisted) ---
    wih0 = p_ref[0:Fp, :]                       # (Fp, 4H)
    whh0 = p_ref[Fp:Fp + H, :]                  # (H, 4H)
    w1 = p_ref[Fp + H:Fp + 3 * H, :]            # (2H, 4H)  = [wih1_t ; whh1_t]
    r = Fp + 3 * H
    wout = p_ref[r:r + 1, 0:H]                  # (1, H)
    bout = p_ref[r:r + 1, H:H + 1]              # (1, 1)
    b0 = p_ref[r + 1:r + 2, :]                  # (1, 4H)
    b1 = p_ref[r + 2:r + 3, :]                  # (1, 4H)

    # Layer-0 input projection for all timesteps in one matmul, bias folded in.
    xp = jnp.dot(x_ref[...], wih0, preferred_element_type=f32) + b0   # (T*B, 4H)

    # Hoisted bias broadcast for layer 1 (avoid re-emitting broadcast per unrolled step).
    b1b = jnp.broadcast_to(b1, (B, G))

    def activate(gates):
        # gate order [i, f, o, g]: one sigmoid over 3H lanes + one tanh over H lanes
        sig = jax.nn.sigmoid(gates[:, :3 * H])
        g = jnp.tanh(gates[:, 3 * H:])
        return sig[:, 0:H], sig[:, H:2 * H], sig[:, 2 * H:3 * H], g

    # ---- t = 0: initial h/c are zero -> drop recurrent terms & forget-gate product ----
    i0, f0, o0, gg0 = activate(xp[0:B, :])
    c0 = i0 * gg0
    h0 = o0 * jnp.tanh(c0)

    g1 = jnp.dot(h0, w1[:H, :], preferred_element_type=f32) + b1b      # half-width matmul
    i1, f1, o1, gg1 = activate(g1)
    c1 = i1 * gg1
    h1 = o1 * jnp.tanh(c1)

    # ---- t = 1 .. T-1: tiny static trip count -> fully unrolled recurrence ----
    for t in range(1, T):
        # layer 0: only the recurrent matmul remains in the loop
        g0 = xp[t * B:(t + 1) * B, :] + jnp.dot(h0, whh0, preferred_element_type=f32)
        i0, f0, o0, gg0 = activate(g0)
        c0 = f0 * c0 + i0 * gg0
        h0 = o0 * jnp.tanh(c0)

        # layer 1: fused input+recurrent matmul via stacked weights (one MXU push)
        cat = jnp.concatenate([h0, h1], axis=-1)                        # (B, 2H)
        g1 = jnp.dot(cat, w1, preferred_element_type=f32) + b1b
        i1, f1, o1, gg1 = activate(g1)
        c1 = f1 * c1 + i1 * gg1
        h1 = o1 * jnp.tanh(c1)

    # Linear(H, 1): VPU multiply + lane reduce (skip the N=1 MXU push)
    out_ref[...] = jnp.sum(h1 * wout, axis=-1, keepdims=True) + bout


def init_params(key, feature_num, H=16):
    # PyTorch LSTM / Linear default init: U(-1/sqrt(H), 1/sqrt(H)); PyTorch gate
    # order along the 4H axis is [i, f, g, o].
    bound = 1.0 / jnp.sqrt(jnp.float32(H))
    ks = jax.random.split(key, 10)
    u = lambda k, shape: jax.random.uniform(k, shape, jnp.float32, -bound, bound)
    return {
        "wih0": u(ks[0], (4 * H, feature_num)),
        "whh0": u(ks[1], (4 * H, H)),
        "bih0": u(ks[2], (4 * H,)),
        "bhh0": u(ks[3], (4 * H,)),
        "wih1": u(ks[4], (4 * H, H)),
        "whh1": u(ks[5], (4 * H, H)),
        "bih1": u(ks[6], (4 * H,)),
        "bhh1": u(ks[7], (4 * H,)),
        "wout": u(ks[8], (1, H)),
        "bout": u(ks[9], (1,)),
    }


def pack_params(p, feature_num, H=16, Fp=8):
    """Pack all weights/biases into one (Fp+3H+3, 4H) slab, gate order [i,f,o,g]."""
    G = 4 * H
    # i,f,g,o -> i,f,o,g permutation of the 4H axis
    perm = jnp.concatenate([jnp.arange(0, H), jnp.arange(H, 2 * H),
                            jnp.arange(3 * H, 4 * H), jnp.arange(2 * H, 3 * H)])

    def reorder_t(w):                       # (4H, K) -> (K, 4H), gate-reordered
        return w[perm, :].T

    wih0_t = reorder_t(p["wih0"])           # (F, 4H)
    whh0_t = reorder_t(p["whh0"])           # (H, 4H)
    wih1_t = reorder_t(p["wih1"])           # (H, 4H)
    whh1_t = reorder_t(p["whh1"])           # (H, 4H)
    b0 = (p["bih0"] + p["bhh0"])[perm].reshape(1, G)
    b1 = (p["bih1"] + p["bhh1"])[perm].reshape(1, G)

    wih0_p = jnp.zeros((Fp, G), jnp.float32).at[:feature_num, :].set(wih0_t)
    wrow = jnp.zeros((1, G), jnp.float32)
    wrow = wrow.at[0, :H].set(p["wout"][0])
    wrow = wrow.at[0, H].set(p["bout"][0])

    return jnp.concatenate([wih0_p, whh0_t, wih1_t, whh1_t, wrow, b0, b1], axis=0)


@functools.partial(jax.jit, static_argnames=("H", "Fp"))
def model_forward(x, slab, H=16, Fp=8):
    B, T, F = x.shape
    # layout plumbing in the wrapper: time-major, lane-padded 2-D input
    xt = jnp.transpose(x, (1, 0, 2)).reshape(T * B, F)
    xt = jnp.pad(xt, ((0, 0), (0, Fp - F)))

    kernel = functools.partial(_lstm_kernel, B=B, T=T, Fp=Fp, H=H)
    vmem = pl.BlockSpec(memory_space=pltpu.VMEM)
    return pl.pallas_call(
        kernel,
        out_shape=jax.ShapeDtypeStruct((B, 1), jnp.float32),
        in_specs=[vmem, vmem],
        out_specs=vmem,
    )(xt, slab)


def reference_forward(x, p, H=16):
    # Pure-JAX reference with PyTorch semantics (gate order i,f,g,o).
    B, T, F = x.shape

    def cell(x_t, h, c, wih, whh, bih, bhh):
        gates = x_t @ wih.T + h @ whh.T + bih + bhh
        i = jax.nn.sigmoid(gates[:, 0:H])
        f = jax.nn.sigmoid(gates[:, H:2 * H])
        g = jnp.tanh(gates[:, 2 * H:3 * H])
        o = jax.nn.sigmoid(gates[:, 3 * H:4 * H])
        c_new = f * c + i * g
        return o * jnp.tanh(c_new), c_new

    h0 = c0 = h1 = c1 = jnp.zeros((B, H), jnp.float32)
    for t in range(T):
        h0, c0 = cell(x[:, t, :], h0, c0, p["wih0"], p["whh0"], p["bih0"], p["bhh0"])
        h1, c1 = cell(h0, h1, c1, p["wih1"], p["whh1"], p["bih1"], p["bhh1"])
    return h1 @ p["wout"].T + p["bout"]


if __name__ == "__main__":
    # q=4 -> window len 5, input = first 4 rows; cols 2:8 -> 6 features; H=16.
    # B=8 batches multiple independent windows per call (fills vreg sublanes).
    B, T, F, H = 8, 4, 6, 16
    key = jax.random.PRNGKey(0)
    kx, kp = jax.random.split(key)
    x = jax.random.normal(kx, (B, T, F), jnp.float32)
    params = init_params(kp, F, H)
    slab = pack_params(params, F, H)

    out = model_forward(x, slab, H=H)
    out = jax.block_until_ready(out)

    ref = reference_forward(x, params, H=H)
    assert out.shape == (B, 1)
    assert jnp.allclose(out, ref, atol=1e-5, rtol=1e-4)

    print("KERNEL_OK")
</pallas_src>

<mosaic_0001>
module attributes {stable_mosaic.version = 11 : i64} {
  func.func @_lstm_kernel(%arg0: memref<32x8xf32, #tpu.memory_space<vmem>>, %arg1: memref<59x64xf32, #tpu.memory_space<vmem>>, %arg2: memref<8x1xf32, #tpu.memory_space<vmem>>) attributes {dimension_semantics = [], scalar_prefetch = 0 : i64, scratch_operands = 0 : i64, tpu.core_type = #tpu.core_type<tc>} {
    %c0 = arith.constant 0 : index
    %c0_0 = arith.constant 0 : index
    %0 = vector.load %arg1[%c0, %c0_0] : memref<59x64xf32, #tpu.memory_space<vmem>>, vector<8x64xf32>
    %c8 = arith.constant 8 : index
    %c0_1 = arith.constant 0 : index
    %1 = vector.load %arg1[%c8, %c0_1] : memref<59x64xf32, #tpu.memory_space<vmem>>, vector<16x64xf32>
    %c24 = arith.constant 24 : index
    %c0_2 = arith.constant 0 : index
    %2 = vector.load %arg1[%c24, %c0_2] : memref<59x64xf32, #tpu.memory_space<vmem>>, vector<32x64xf32>
    %c56 = arith.constant 56 : index
    %c0_3 = arith.constant 0 : index
    %3 = vector.load %arg1[%c56, %c0_3] : memref<59x64xf32, #tpu.memory_space<vmem>>, vector<1x16xf32>
    %c56_4 = arith.constant 56 : index
    %c16 = arith.constant 16 : index
    %4 = vector.load %arg1[%c56_4, %c16] : memref<59x64xf32, #tpu.memory_space<vmem>>, vector<1x1xf32>
    %c57 = arith.constant 57 : index
    %c0_5 = arith.constant 0 : index
    %5 = vector.load %arg1[%c57, %c0_5] : memref<59x64xf32, #tpu.memory_space<vmem>>, vector<1x64xf32>
    %c58 = arith.constant 58 : index
    %c0_6 = arith.constant 0 : index
    %6 = vector.load %arg1[%c58, %c0_6] : memref<59x64xf32, #tpu.memory_space<vmem>>, vector<1x64xf32>
    %c0_7 = arith.constant 0 : index
    %c0_8 = arith.constant 0 : index
    %7 = vector.load %arg0[%c0_7, %c0_8] : memref<32x8xf32, #tpu.memory_space<vmem>>, vector<32x8xf32>
    %cst = arith.constant dense<0.000000e+00> : vector<32x64xf32>
    %8 = tpu.matmul %7, %0, %cst {dimension_numbers = #tpu.dot_dimension_numbers<[1], [0], [0], [1], [0, 0, 1, 1], [], []>} : vector<32x8xf32>, vector<8x64xf32>, vector<32x64xf32> -> vector<32x64xf32>
    %9 = vector.broadcast %5 : vector<1x64xf32> to vector<32x64xf32>
    %10 = arith.addf %8, %9 : vector<32x64xf32>
    %11 = vector.shape_cast %6 : vector<1x64xf32> to vector<1x64xf32>
    %12 = vector.broadcast %11 : vector<1x64xf32> to vector<8x64xf32>
    %13 = vector.extract_strided_slice %10 {offsets = [0, 0], sizes = [8, 64], strides = [1, 1]} : vector<32x64xf32> to vector<8x64xf32>
    %14 = vector.extract_strided_slice %13 {offsets = [0, 0], sizes = [8, 48], strides = [1, 1]} : vector<8x64xf32> to vector<8x48xf32>
    %15 = arith.negf %14 : vector<8x48xf32>
    %16 = math.exp %15 : vector<8x48xf32>
    %cst_9 = arith.constant 1.000000e+00 : f32
    %17 = vector.broadcast %cst_9 : f32 to vector<8x48xf32>
    %18 = arith.addf %17, %16 : vector<8x48xf32>
    %19 = arith.divf %17, %18 : vector<8x48xf32>
    %20 = vector.extract_strided_slice %13 {offsets = [0, 48], sizes = [8, 16], strides = [1, 1]} : vector<8x64xf32> to vector<8x16xf32>
    %21 = math.tanh %20 : vector<8x16xf32>
    %22 = vector.extract_strided_slice %19 {offsets = [0, 0], sizes = [8, 16], strides = [1, 1]} : vector<8x48xf32> to vector<8x16xf32>
    %23 = vector.extract_strided_slice %19 {offsets = [0, 32], sizes = [8, 16], strides = [1, 1]} : vector<8x48xf32> to vector<8x16xf32>
    %24 = arith.mulf %22, %21 : vector<8x16xf32>
    %25 = math.tanh %24 : vector<8x16xf32>
    %26 = arith.mulf %23, %25 : vector<8x16xf32>
    %27 = vector.extract_strided_slice %2 {offsets = [0, 0], sizes = [16, 64], strides = [1, 1]} : vector<32x64xf32> to vector<16x64xf32>
    %cst_10 = arith.constant dense<0.000000e+00> : vector<8x64xf32>
    %28 = tpu.matmul %26, %27, %cst_10 {dimension_numbers = #tpu.dot_dimension_numbers<[1], [0], [0], [1], [0, 0, 1, 1], [], []>} : vector<8x16xf32>, vector<16x64xf32>, vector<8x64xf32> -> vector<8x64xf32>
    %29 = arith.addf %28, %12 : vector<8x64xf32>
    %30 = vector.extract_strided_slice %29 {offsets = [0, 0], sizes = [8, 48], strides = [1, 1]} : vector<8x64xf32> to vector<8x48xf32>
    %31 = arith.negf %30 : vector<8x48xf32>
    %32 = math.exp %31 : vector<8x48xf32>
    %cst_11 = arith.constant 1.000000e+00 : f32
    %33 = vector.broadcast %cst_11 : f32 to vector<8x48xf32>
    %34 = arith.addf %33, %32 : vector<8x48xf32>
    %35 = arith.divf %33, %34 : vector<8x48xf32>
    %36 = vector.extract_strided_slice %29 {offsets = [0, 48], sizes = [8, 16], strides = [1, 1]} : vector<8x64xf32> to vector<8x16xf32>
    %37 = math.tanh %36 : vector<8x16xf32>
    %38 = vector.extract_strided_slice %35 {offsets = [0, 0], sizes = [8, 16], strides = [1, 1]} : vector<8x48xf32> to vector<8x16xf32>
    %39 = vector.extract_strided_slice %35 {offsets = [0, 32], sizes = [8, 16], strides = [1, 1]} : vector<8x48xf32> to vector<8x16xf32>
    %40 = arith.mulf %38, %37 : vector<8x16xf32>
    %41 = math.tanh %40 : vector<8x16xf32>
    %42 = arith.mulf %39, %41 : vector<8x16xf32>
    %43 = vector.extract_strided_slice %10 {offsets = [8, 0], sizes = [8, 64], strides = [1, 1]} : vector<32x64xf32> to vector<8x64xf32>
    %cst_12 = arith.constant dense<0.000000e+00> : vector<8x64xf32>
    %44 = tpu.matmul %26, %1, %cst_12 {dimension_numbers = #tpu.dot_dimension_numbers<[1], [0], [0], [1], [0, 0, 1, 1], [], []>} : vector<8x16xf32>, vector<16x64xf32>, vector<8x64xf32> -> vector<8x64xf32>
    %45 = arith.addf %43, %44 : vector<8x64xf32>
    %46 = vector.extract_strided_slice %45 {offsets = [0, 0], sizes = [8, 48], strides = [1, 1]} : vector<8x64xf32> to vector<8x48xf32>
    %47 = arith.negf %46 : vector<8x48xf32>
    %48 = math.exp %47 : vector<8x48xf32>
    %cst_13 = arith.constant 1.000000e+00 : f32
    %49 = vector.broadcast %cst_13 : f32 to vector<8x48xf32>
    %50 = arith.addf %49, %48 : vector<8x48xf32>
    %51 = arith.divf %49, %50 : vector<8x48xf32>
    %52 = vector.extract_strided_slice %45 {offsets = [0, 48], sizes = [8, 16], strides = [1, 1]} : vector<8x64xf32> to vector<8x16xf32>
    %53 = math.tanh %52 : vector<8x16xf32>
    %54 = vector.extract_strided_slice %51 {offsets = [0, 0], sizes = [8, 16], strides = [1, 1]} : vector<8x48xf32> to vector<8x16xf32>
    %55 = vector.extract_strided_slice %51 {offsets = [0, 16], sizes = [8, 16], strides = [1, 1]} : vector<8x48xf32> to vector<8x16xf32>
    %56 = vector.extract_strided_slice %51 {offsets = [0, 32], sizes = [8, 16], strides = [1, 1]} : vector<8x48xf32> to vector<8x16xf32>
    %57 = arith.mulf %55, %24 : vector<8x16xf32>
    %58 = arith.mulf %54, %53 : vector<8x16xf32>
    %59 = arith.addf %57, %58 : vector<8x16xf32>
    %60 = math.tanh %59 : vector<8x16xf32>
    %61 = arith.mulf %56, %60 : vector<8x16xf32>
    %62 = tpu.concatenate %61, %42 in 1 : vector<8x16xf32>, vector<8x16xf32> -> vector<8x32xf32>
    %cst_14 = arith.constant dense<0.000000e+00> : vector<8x64xf32>
    %63 = tpu.matmul %62, %2, %cst_14 {dimension_numbers = #tpu.dot_dimension_numbers<[1], [0], [0], [1], [0, 0, 1, 1], [], []>} : vector<8x32xf32>, vector<32x64xf32>, vector<8x64xf32> -> vector<8x64xf32>
    %64 = arith.addf %63, %12 : vector<8x64xf32>
    %65 = vector.extract_strided_slice %64 {offsets = [0, 0], sizes = [8, 48], strides = [1, 1]} : vector<8x64xf32> to vector<8x48xf32>
    %66 = arith.negf %65 : vector<8x48xf32>
    %67 = math.exp %66 : vector<8x48xf32>
    %cst_15 = arith.constant 1.000000e+00 : f32
    %68 = vector.broadcast %cst_15 : f32 to vector<8x48xf32>
    %69 = arith.addf %68, %67 : vector<8x48xf32>
    %70 = arith.divf %68, %69 : vector<8x48xf32>
    %71 = vector.extract_strided_slice %64 {offsets = [0, 48], sizes = [8, 16], strides = [1, 1]} : vector<8x64xf32> to vector<8x16xf32>
    %72 = math.tanh %71 : vector<8x16xf32>
    %73 = vector.extract_strided_slice %70 {offsets = [0, 0], sizes = [8, 16], strides = [1, 1]} : vector<8x48xf32> to vector<8x16xf32>
    %74 = vector.extract_strided_slice %70 {offsets = [0, 16], sizes = [8, 16], strides = [1, 1]} : vector<8x48xf32> to vector<8x16xf32>
    %75 = vector.extract_strided_slice %70 {offsets = [0, 32], sizes = [8, 16], strides = [1, 1]} : vector<8x48xf32> to vector<8x16xf32>
    %76 = arith.mulf %74, %40 : vector<8x16xf32>
    %77 = arith.mulf %73, %72 : vector<8x16xf32>
    %78 = arith.addf %76, %77 : vector<8x16xf32>
    %79 = math.tanh %78 : vector<8x16xf32>
    %80 = arith.mulf %75, %79 : vector<8x16xf32>
    %81 = vector.extract_strided_slice %10 {offsets = [16, 0], sizes = [8, 64], strides = [1, 1]} : vector<32x64xf32> to vector<8x64xf32>
    %cst_16 = arith.constant dense<0.000000e+00> : vector<8x64xf32>
    %82 = tpu.matmul %61, %1, %cst_16 {dimension_numbers = #tpu.dot_dimension_numbers<[1], [0], [0], [1], [0, 0, 1, 1], [], []>} : vector<8x16xf32>, vector<16x64xf32>, vector<8x64xf32> -> vector<8x64xf32>
    %83 = arith.addf %81, %82 : vector<8x64xf32>
    %84 = vector.extract_strided_slice %83 {offsets = [0, 0], sizes = [8, 48], strides = [1, 1]} : vector<8x64xf32> to vector<8x48xf32>
    %85 = arith.negf %84 : vector<8x48xf32>
    %86 = math.exp %85 : vector<8x48xf32>
    %cst_17 = arith.constant 1.000000e+00 : f32
    %87 = vector.broadcast %cst_17 : f32 to vector<8x48xf32>
    %88 = arith.addf %87, %86 : vector<8x48xf32>
    %89 = arith.divf %87, %88 : vector<8x48xf32>
    %90 = vector.extract_strided_slice %83 {offsets = [0, 48], sizes = [8, 16], strides = [1, 1]} : vector<8x64xf32> to vector<8x16xf32>
    %91 = math.tanh %90 : vector<8x16xf32>
    %92 = vector.extract_strided_slice %89 {offsets = [0, 0], sizes = [8, 16], strides = [1, 1]} : vector<8x48xf32> to vector<8x16xf32>
    %93 = vector.extract_strided_slice %89 {offsets = [0, 16], sizes = [8, 16], strides = [1, 1]} : vector<8x48xf32> to vector<8x16xf32>
    %94 = vector.extract_strided_slice %89 {offsets = [0, 32], sizes = [8, 16], strides = [1, 1]} : vector<8x48xf32> to vector<8x16xf32>
    %95 = arith.mulf %93, %59 : vector<8x16xf32>
    %96 = arith.mulf %92, %91 : vector<8x16xf32>
    %97 = arith.addf %95, %96 : vector<8x16xf32>
    %98 = math.tanh %97 : vector<8x16xf32>
    %99 = arith.mulf %94, %98 : vector<8x16xf32>
    %100 = tpu.concatenate %99, %80 in 1 : vector<8x16xf32>, vector<8x16xf32> -> vector<8x32xf32>
    %cst_18 = arith.constant dense<0.000000e+00> : vector<8x64xf32>
    %101 = tpu.matmul %100, %2, %cst_18 {dimension_numbers = #tpu.dot_dimension_numbers<[1], [0], [0], [1], [0, 0, 1, 1], [], []>} : vector<8x32xf32>, vector<32x64xf32>, vector<8x64xf32> -> vector<8x64xf32>
    %102 = arith.addf %101, %12 : vector<8x64xf32>
    %103 = vector.extract_strided_slice %102 {offsets = [0, 0], sizes = [8, 48], strides = [1, 1]} : vector<8x64xf32> to vector<8x48xf32>
    %104 = arith.negf %103 : vector<8x48xf32>
    %105 = math.exp %104 : vector<8x48xf32>
    %cst_19 = arith.constant 1.000000e+00 : f32
    %106 = vector.broadcast %cst_19 : f32 to vector<8x48xf32>
    %107 = arith.addf %106, %105 : vector<8x48xf32>
    %108 = arith.divf %106, %107 : vector<8x48xf32>
    %109 = vector.extract_strided_slice %102 {offsets = [0, 48], sizes = [8, 16], strides = [1, 1]} : vector<8x64xf32> to vector<8x16xf32>
    %110 = math.tanh %109 : vector<8x16xf32>
    %111 = vector.extract_strided_slice %108 {offsets = [0, 0], sizes = [8, 16], strides = [1, 1]} : vector<8x48xf32> to vector<8x16xf32>
    %112 = vector.extract_strided_slice %108 {offsets = [0, 16], sizes = [8, 16], strides = [1, 1]} : vector<8x48xf32> to vector<8x16xf32>
    %113 = vector.extract_strided_slice %108 {offsets = [0, 32], sizes = [8, 16], strides = [1, 1]} : vector<8x48xf32> to vector<8x16xf32>
    %114 = arith.mulf %112, %78 : vector<8x16xf32>
    %115 = arith.mulf %111, %110 : vector<8x16xf32>
    %116 = arith.addf %114, %115 : vector<8x16xf32>
    %117 = math.tanh %116 : vector<8x16xf32>
    %118 = arith.mulf %113, %117 : vector<8x16xf32>
    %119 = vector.extract_strided_slice %10 {offsets = [24, 0], sizes = [8, 64], strides = [1, 1]} : vector<32x64xf32> to vector<8x64xf32>
    %cst_20 = arith.constant dense<0.000000e+00> : vector<8x64xf32>
    %120 = tpu.matmul %99, %1, %cst_20 {dimension_numbers = #tpu.dot_dimension_numbers<[1], [0], [0], [1], [0, 0, 1, 1], [], []>} : vector<8x16xf32>, vector<16x64xf32>, vector<8x64xf32> -> vector<8x64xf32>
    %121 = arith.addf %119, %120 : vector<8x64xf32>
    %122 = vector.extract_strided_slice %121 {offsets = [0, 0], sizes = [8, 48], strides = [1, 1]} : vector<8x64xf32> to vector<8x48xf32>
    %123 = arith.negf %122 : vector<8x48xf32>
    %124 = math.exp %123 : vector<8x48xf32>
    %cst_21 = arith.constant 1.000000e+00 : f32
    %125 = vector.broadcast %cst_21 : f32 to vector<8x48xf32>
    %126 = arith.addf %125, %124 : vector<8x48xf32>
    %127 = arith.divf %125, %126 : vector<8x48xf32>
    %128 = vector.extract_strided_slice %121 {offsets = [0, 48], sizes = [8, 16], strides = [1, 1]} : vector<8x64xf32> to vector<8x16xf32>
    %129 = math.tanh %128 : vector<8x16xf32>
    %130 = vector.extract_strided_slice %127 {offsets = [0, 0], sizes = [8, 16], strides = [1, 1]} : vector<8x48xf32> to vector<8x16xf32>
    %131 = vector.extract_strided_slice %127 {offsets = [0, 16], sizes = [8, 16], strides = [1, 1]} : vector<8x48xf32> to vector<8x16xf32>
    %132 = vector.extract_strided_slice %127 {offsets = [0, 32], sizes = [8, 16], strides = [1, 1]} : vector<8x48xf32> to vector<8x16xf32>
    %133 = arith.mulf %131, %97 : vector<8x16xf32>
    %134 = arith.mulf %130, %129 : vector<8x16xf32>
    %135 = arith.addf %133, %134 : vector<8x16xf32>
    %136 = math.tanh %135 : vector<8x16xf32>
    %137 = arith.mulf %132, %136 : vector<8x16xf32>
    %138 = tpu.concatenate %137, %118 in 1 : vector<8x16xf32>, vector<8x16xf32> -> vector<8x32xf32>
    %cst_22 = arith.constant dense<0.000000e+00> : vector<8x64xf32>
    %139 = tpu.matmul %138, %2, %cst_22 {dimension_numbers = #tpu.dot_dimension_numbers<[1], [0], [0], [1], [0, 0, 1, 1], [], []>} : vector<8x32xf32>, vector<32x64xf32>, vector<8x64xf32> -> vector<8x64xf32>
    %140 = arith.addf %139, %12 : vector<8x64xf32>
    %141 = vector.extract_strided_slice %140 {offsets = [0, 0], sizes = [8, 48], strides = [1, 1]} : vector<8x64xf32> to vector<8x48xf32>
    %142 = arith.negf %141 : vector<8x48xf32>
    %143 = math.exp %142 : vector<8x48xf32>
    %cst_23 = arith.constant 1.000000e+00 : f32
    %144 = vector.broadcast %cst_23 : f32 to vector<8x48xf32>
    %145 = arith.addf %144, %143 : vector<8x48xf32>
    %146 = arith.divf %144, %145 : vector<8x48xf32>
    %147 = vector.extract_strided_slice %140 {offsets = [0, 48], sizes = [8, 16], strides = [1, 1]} : vector<8x64xf32> to vector<8x16xf32>
    %148 = math.tanh %147 : vector<8x16xf32>
    %149 = vector.extract_strided_slice %146 {offsets = [0, 0], sizes = [8, 16], strides = [1, 1]} : vector<8x48xf32> to vector<8x16xf32>
    %150 = vector.extract_strided_slice %146 {offsets = [0, 16], sizes = [8, 16], strides = [1, 1]} : vector<8x48xf32> to vector<8x16xf32>
    %151 = vector.extract_strided_slice %146 {offsets = [0, 32], sizes = [8, 16], strides = [1, 1]} : vector<8x48xf32> to vector<8x16xf32>
    %152 = arith.mulf %150, %116 : vector<8x16xf32>
    %153 = arith.mulf %149, %148 : vector<8x16xf32>
    %154 = arith.addf %152, %153 : vector<8x16xf32>
    %155 = math.tanh %154 : vector<8x16xf32>
    %156 = arith.mulf %151, %155 : vector<8x16xf32>
    %157 = vector.broadcast %3 : vector<1x16xf32> to vector<8x16xf32>
    %158 = arith.mulf %156, %157 : vector<8x16xf32>
    %cst_24 = arith.constant dense<0.000000e+00> : vector<8xf32>
    %159 = vector.multi_reduction <add>, %158, %cst_24 [1] : vector<8x16xf32> to vector<8xf32>
    %160 = vector.shape_cast %159 : vector<8xf32> to vector<8x1xf32>
    %161 = vector.broadcast %4 : vector<1x1xf32> to vector<8x1xf32>
    %162 = arith.addf %160, %161 : vector<8x1xf32>
    %c0_25 = arith.constant 0 : index
    %c0_26 = arith.constant 0 : index
    %163 = vector.load %arg2[%c0_25, %c0_26] : memref<8x1xf32, #tpu.memory_space<vmem>>, vector<8x1xf32>
    tpu.vector_store %arg2[%c0_25, %c0_26], %162 {strides = array<i32>} : memref<8x1xf32, #tpu.memory_space<vmem>>, vector<8x1xf32>,
    return
  }
}

</mosaic_0001>

<bundles_post_ra>
// kernel: model_forward.1
= control target key start
LH: loop header
LB: loop body
LE: loop exit
PB: predicated region body
PF: predicated region fallthrough
CT: control target
= control target key end

     0   :  { %vm29_vm0 = vcmask 64512   ;;  %s1111_s17 = smov 80   ;;  %v1112_v16 = vmov 0.0|0.0   ;;  %vm1113_vm1 = vmmov 0   ;;  %v1114_v18 = vmov 0.0   ;;  %s1115_s22 = smov 32   ;;  %s1287_s1 = inlined_call_operand.vmem [shape: f32[59,64], index: 1, kind: input, shape index: {}]   ;;  %s1288_s0 = inlined_call_operand.vmem [shape: f32[32,8], index: 0, kind: input, shape index: {}]   ;;  %s1289_s2 = inlined_call_operand.vmem [shape: f32[8,1], index: 2, kind: output, shape index: {}]  }
   0x1   :  { %v11_v0 = vld [vmem:[%s1287_s1] sm:$0xff]  ;;  %v22_v2 = vld [vmem:[%s1288_s0 + $0x8] sm:$0xff]  ;;  %v1148_v3 = vld [vmem:[%s1287_s1 + $0x39] ss:$0 sm:$0xff]  ;;  %1009 = vmatprep.subr.bf16.mxu1 %v1112_v16  ;;  %952 = vmatprep.mubr.msk.f32.mxu1 %vm1113_vm1, %v1114_v18  ;;  %s1116_s23 = smov 16   ;;  %s1117_s24 = smov 96  }
   0x2   :  { %v21_v1 = vld [vmem:[%s1288_s0] sm:$0xff]  ;;  %940 = vmatprep.subr.mxu0 %v11_v0  ;;  %v14_v14 = vld [vmem:[%s1287_s1 + $0x18] sm:$0xff]  ;;  %v12_v22 = vld [vmem:[%s1287_s1 + $0x8] sm:$0xff]  ;;  %vm152_vm2 = vcmask 130048   ;;  %vm351_vm3 = vcmask 261120   ;;  %vm880_vm4 = vcmask 7168  }
   0x3   :  { %942 = vmatprep.mubr.msk.f32.mxu0 %vm29_vm0, %v21_v1  ;;  %941 = vmatpush3.msra.mxu0 %v11_v0  ;;  %v15_v15 = vld [vmem:[%s1287_s1 + $0x20] sm:$0xff]  ;;  %v13_v23 = vld [vmem:[%s1287_s1 + $0x10] sm:$0xff]  ;;  %v1193_v29 = vld [vmem:[%s1287_s1 + $0x3a] ss:$0 sm:$0xff] }
   0x4   :  { %943 = vmatmul.mubr.msk.f32.vlgmr.msra.gmra.mrb[0].mxu0 %vm29_vm0, %v22_v2  ;;  %v1159_v17 = vpack.c.bf16 %v15_v15, %v14_v14  ;;  %1015 = vmatprep.subr.bf16.mxu0 %v1112_v16  ;;  %v1177_v24 = vpack.c.bf16 %v13_v23, %v12_v22  ;;  %v23_v53 = vld [vmem:[%s1288_s0 + $0x10] sm:$0xff]  ;;  %v24_v54 = vld [vmem:[%s1288_s0 + $0x18] sm:$0xff]  ;;  %v16_v55 = vld [vmem:[%s1287_s1 + $0x28] sm:$0xff]  ;;  %s1118_s0 = smov 112  }
   0x5   :  { %945 = vmatprep.mubr.msk.f32.mxu0 %vm29_vm0, %v23_v53  ;;  %v17_v56 = vld [vmem:[%s1287_s1 + $0x30] sm:$0xff] }
   0x6   :  { %1011 = vmatpush3.bf16.msra.mxu1 %v1159_v17  ;;  %1017 = vmatpush3.bf16.msra.mxu0 %v1159_v17  ;;  %v1217_v57 = vpack.c.bf16 %v17_v56, %v16_v55 }
   0x7   :  { %1012 = vmatprep.subr.bf16.mxu1 %v1112_v16  ;;  %1018 = vmatprep.subr.bf16.mxu0 %v1112_v16 }
   0x8   :  { %946 = vmatmul.mubr.msk.f32.gmra.mrb[2].mxu0 %vm29_vm0, %v24_v54 }
   0x9   :  { %970 = vmatprep.mubr.msk.f32.mxu0 %vm1113_vm1, %v1114_v18 }
   0xa   :  { %1020 = vmatpush3.bf16.msra.mxu0 %v1217_v57 }
   0xb   :  { %1021 = vmatprep.subr.bf16.mxu0 %v1112_v16 }
  0xd7   :  { %v944_v4 = vpop.f32.mrb[0].mxu0 }
  0xd8   :  { %v108_v5 = vpop.f32.mrb[1].mxu0  ;;  %v114_v28 = vadd.f32 %v944_v4, %v1148_v3 }
  0xd9   :  { %v109_v6 = vadd.f32 %v1148_v3, %v108_v5 }
  0xdb   :  { %1047 = vtanh.f32 %v109_v6  ;;  %v892_v8 = vmul.f32 -1.442695, %v109_v6  ;;  %v1226_v63 = vpop.f32.mrb[2].mxu0 }
  0xdc   :  { %v118_v0 = vpop.f32.mrb[3].mxu0 }
  0xdd   :  { %1049 = vpow2.f32 %v892_v8  ;;  %v119_v8 = vadd.f32 %v1148_v3, %v118_v0 }
  0xe5   :  { %v1048_v7 = vpop.eup %1047 }
  0xe6   :  { %139 = vrot.lane.b32.xlu0 %v1048_v7, %s1111_s17 }
  0xe7   :  { %v1050_v9 = vpop.eup %1049 }
  0xe8   :  { %v134_v10 = vadd.f32 1.0, %v1050_v9 }
  0xea   :  { %1051 = vrcp.f32 %v134_v10 }
  0xf4   :  { %v1052_v11 = vpop.eup %1051 }
 0x158   :  { %v140_v12 = vpop.permute.xlu0 %139 }
 0x159   :  { %v142_v13 = vmul.f32 %v1052_v11, %v140_v12 }
 0x15b   :  { %1053 = vtanh.f32 %v142_v13 }
 0x165   :  { %v1054_v19 = vpop.eup %1053 }
 0x166   :  { %145 = vrot.lane.b32.xlu0 %v1054_v19, %s1115_s22 }
 0x16a   :  { %322 = vrot.lane.b32.xlu0 %v142_v13, %s1116_s23 }
 0x1d8   :  { %v146_v20 = vpop.permute.xlu0 %145 }
 0x1d9   :  { %v148_v21 = vmul.f32 %v1052_v11, %v146_v20 }
 0x1db   :  { %150 = vrot.lane.b32.xlu1 %v148_v21, %s1117_s24 }
 0x1dc   :  { %v323_v49 = vpop.permute.xlu0 %322 }
 0x24d   :  { %v151_v25 = vpop.permute.xlu1 %150 }
 0x24e   :  { %953 = vmatmul.mubr.msk.f32.vlgmr.msra.gmra.mrb[0].mxu1 %vm152_vm2, %v151_v25 }
 0x24f   :  { %1014 = vmatpush3.bf16.msra.mxu1 %v1177_v24  ;;  %959 = vmatprep.mubr.msk.f32.mxu1 %vm1113_vm1, %v1114_v18 }
 0x250   :  { %1030 = vmatprep.subr.bf16.mxu1 %v1112_v16 }
 0x252   :  { %960 = vmatmul.mubr.msk.f32.vlgmr.msra.gmra.mrb[2].mxu1 %vm152_vm2, %v151_v25 }
 0x253   :  { %1032 = vmatpush3.bf16.msra.mxu1 %v1177_v24  ;;  %995 = vmatprep.mubr.msk.f32.mxu1 %vm1113_vm1, %v1114_v18 }
 0x254   :  { %1033 = vmatprep.subr.bf16.mxu1 %v1112_v16 }
 0x321   :  { %v221_v26 = vpop.f32.mrb[0].mxu1 }
 0x322   :  { %v954_v27 = vpop.f32.mrb[1].mxu1  ;;  %v222_v33 = vadd.f32 %v1193_v29, %v221_v26 }
 0x324   :  { %v894_v37 = vmul.f32 -1.442695, %v222_v33 }
 0x325   :  { %v309_v30 = vpop.f32.mrb[2].mxu1 }
 0x326   :  { %v313_v31 = vadd.f32 %v309_v30, %v114_v28  ;;  %v961_v32 = vpop.f32.mrb[3].mxu1 }
 0x328   :  { %1055 = vtanh.f32 %v313_v31  ;;  %v896_v36 = vmul.f32 -1.442695, %v313_v31 }
 0x329   :  { %1057 = vtanh.f32 %v222_v33 }
 0x32a   :  { %1059 = vpow2.f32 %v896_v36 }
 0x32b   :  { %1061 = vpow2.f32 %v894_v37 }
 0x332   :  { %v1056_v34 = vpop.eup %1055 }
 0x333   :  { %327 = vrot.lane.b32.xlu1 %v1056_v34, %s1111_s17  ;;  %v1058_v35 = vpop.eup %1057 }
 0x334   :  { %v1060_v38 = vpop.eup %1059 }
 0x335   :  { %v317_v39 = vadd.f32 1.0, %v1060_v38  ;;  %v1062_v40 = vpop.eup %1061 }
 0x336   :  { %v228_v41 = vadd.f32 1.0, %v1062_v40 }
 0x337   :  { %233 = vrot.lane.b32.xlu1 %v1058_v35, %s1111_s17  ;;  %1063 = vrcp.f32 %v317_v39 }
 0x338   :  { %1065 = vrcp.f32 %v228_v41 }
 0x341   :  { %v1064_v42 = vpop.eup %1063 }
 0x342   :  { %v1066_v45 = vpop.eup %1065  ;;  %v325_v50 = vmul.f32 %v1064_v42, %v323_v49 }
 0x3a5   :  { %v328_v43 = vpop.permute.xlu1 %327 }
 0x3a6   :  { %v330_v44 = vmul.f32 %v1064_v42, %v328_v43 }
 0x3a8   :  { %332 = vrot.lane.b32.xlu0 %v330_v44, %s1116_s23 }
 0x3a9   :  { %v234_v46 = vpop.permute.xlu1 %233 }
 0x3aa   :  { %v236_v47 = vmul.f32 %v1066_v45, %v234_v46  ;;  %v124_v46 = vadd.f32 %v1226_v63, %v1148_v3 }
 0x3ac   :  { %1067 = vtanh.f32 %v236_v47 }
 0x3b6   :  { %v1068_v48 = vpop.eup %1067 }
 0x3b7   :  { %239 = vrot.lane.b32.xlu1 %v1068_v48, %s1115_s22 }
 0x41a   :  { %v333_v51 = vpop.permute.xlu0 %332 }
 0x41b   :  { %v1200_v52 = vadd.f32 %v333_v51, %v325_v50 }
 0x41d   :  { %1069 = vtanh.f32 %v1200_v52 }
 0x427   :  { %v1070_v58 = vpop.eup %1069 }
 0x428   :  { %338 = vrot.lane.b32.xlu0 %v1070_v58, %s1116_s23 }
 0x429   :  { %v240_v59 = vpop.permute.xlu1 %239 }
 0x42a   :  { %v242_v60 = vmul.f32 %v1066_v45, %v240_v59 }
 0x42c   :  { %347 = vrot.lane.b32.xlu0 %v242_v60, %s1118_s0 }
 0x49a   :  { %v339_v61 = vpop.permute.xlu0 %338 }
 0x49b   :  { %v341_v62 = vmul.f32 %v1064_v42, %v339_v61 }
 0x49d   :  { %343 = vrot.lane.b32.xlu1 %v341_v62, %s1117_s24 }
 0x49e   :  { %v348_v1 = vpop.permute.xlu0 %347 }
 0x50f   :  { %v344_v2 = vpop.permute.xlu1 %343 }
 0x510   :  { %v350_v4 = vsel %vm152_vm2, %v344_v2, %v348_v1 }
 0x511   :  { %971 = vmatmul.mubr.msk.f32.vlgmr.msra.gmra.mrb[4].mxu0 %vm351_vm3, %v350_v4 }
 0x512   :  { %1023 = vmatpush3.bf16.msra.mxu0 %v1177_v24  ;;  %977 = vmatprep.mubr.msk.f32.mxu0 %vm1113_vm1, %v1114_v18 }
 0x513   :  { %1024 = vmatprep.subr.bf16.mxu0 %v1112_v16 }
 0x515   :  { %978 = vmatmul.mubr.msk.f32.vlgmr.msra.gmra.mrb[6].mxu0 %vm152_vm2, %v344_v2 }
 0x516   :  { %1026 = vmatpush3.bf16.msra.mxu0 %v1159_v17  ;;  %988 = vmatprep.mubr.msk.f32.mxu0 %vm1113_vm1, %v1114_v18 }
 0x517   :  { %1027 = vmatprep.subr.bf16.mxu0 %v1112_v16 }
 0x51a   :  { %1029 = vmatpush3.bf16.msra.mxu0 %v1217_v57 }
 0x5e4   :  { %v421_v5 = vpop.f32.mrb[4].mxu0 }
 0x5e5   :  { %v422_v6 = vadd.f32 %v1193_v29, %v421_v5  ;;  %v972_v7 = vpop.f32.mrb[5].mxu0 }
 0x5e7   :  { %1071 = vtanh.f32 %v422_v6  ;;  %v898_v14 = vmul.f32 -1.442695, %v422_v6 }
 0x5e8   :  { %v521_v9 = vpop.f32.mrb[6].mxu0 }
 0x5e9   :  { %v525_v10 = vadd.f32 %v521_v9, %v119_v8  ;;  %v979_v11 = vpop.f32.mrb[7].mxu0 }
 0x5eb   :  { %1073 = vtanh.f32 %v525_v10  ;;  %v900_v15 = vmul.f32 -1.442695, %v525_v10 }
 0x5ec   :  { %1075 = vpow2.f32 %v898_v14 }
 0x5ed   :  { %1077 = vpow2.f32 %v900_v15 }
 0x5f1   :  { %v1072_v12 = vpop.eup %1071 }
 0x5f2   :  { %438 = vrot.lane.b32.xlu1 %v1072_v12, %s1111_s17 }
 0x5f5   :  { %v1074_v13 = vpop.eup %1073 }
 0x5f6   :  { %433 = vrot.lane.b32.xlu1 %v236_v47, %s1116_s23  ;;  %535 = vrot.lane.b32.xlu0 %v1074_v13, %s1111_s17  ;;  %v1076_v19 = vpop.eup %1075 }
 0x5f7   :  { %v428_v20 = vadd.f32 1.0, %v1076_v19  ;;  %v1078_v21 = vpop.eup %1077 }
 0x5f8   :  { %v529_v22 = vadd.f32 1.0, %v1078_v21 }
 0x5f9   :  { %1079 = vrcp.f32 %v428_v20 }
 0x5fa   :  { %1081 = vrcp.f32 %v529_v22 }
 0x603   :  { %v1080_v23 = vpop.eup %1079 }
 0x604   :  { %v1082_v26 = vpop.eup %1081 }
 0x605   :  { %v533_v34 = vmul.f32 %v1082_v26, %v1200_v52 }
 0x664   :  { %v439_v24 = vpop.permute.xlu1 %438 }
 0x665   :  { %v441_v25 = vmul.f32 %v1080_v23, %v439_v24 }
 0x667   :  { %443 = vrot.lane.b32.xlu0 %v441_v25, %s1116_s23 }
 0x668   :  { %v536_v27 = vpop.permute.xlu0 %535  ;;  %v434_v30 = vpop.permute.xlu1 %433 }
 0x669   :  { %v538_v28 = vmul.f32 %v1082_v26, %v536_v27  ;;  %v436_v31 = vmul.f32 %v1080_v23, %v434_v30 }
 0x66b   :  { %540 = vrot.lane.b32.xlu1 %v538_v28, %s1116_s23  ;;  %v907_v28 = vld [vmem:[%s1287_s1 + $0x38] ss:$0 sm:$0xff] }
 0x6d9   :  { %v444_v32 = vpop.permute.xlu0 %443 }
 0x6da   :  { %v446_v33 = vadd.f32 %v444_v32, %v436_v31 }
 0x6dc   :  { %1083 = vtanh.f32 %v446_v33 }
 0x6dd   :  { %v541_v35 = vpop.permute.xlu1 %540 }
 0x6de   :  { %v543_v36 = vadd.f32 %v541_v35, %v533_v34 }
 0x6e0   :  { %1085 = vtanh.f32 %v543_v36 }
 0x6e6   :  { %v1084_v37 = vpop.eup %1083 }
 0x6e7   :  { %449 = vrot.lane.b32.xlu0 %v1084_v37, %s1116_s23 }
 0x6ea   :  { %v1086_v38 = vpop.eup %1085 }
 0x6eb   :  { %546 = vrot.lane.b32.xlu1 %v1086_v38, %s1116_s23 }
 0x759   :  { %v450_v39 = vpop.permute.xlu0 %449 }
 0x75a   :  { %v452_v40 = vmul.f32 %v1080_v23, %v450_v39 }
 0x75c   :  { %555 = vrot.lane.b32.xlu1 %v452_v40, %s1118_s0 }
 0x75d   :  { %v547_v41 = vpop.permute.xlu1 %546 }
 0x75e   :  { %v549_v42 = vmul.f32 %v1082_v26, %v547_v41 }
 0x760   :  { %551 = vrot.lane.b32.xlu0 %v549_v42, %s1117_s24 }
 0x7ce   :  { %v556_v43 = vpop.permute.xlu1 %555 }
 0x7d2   :  { %v552_v44 = vpop.permute.xlu0 %551 }
 0x7d3   :  { %v558_v45 = vsel %vm152_vm2, %v552_v44, %v556_v43  ;;  %996 = vmatmul.mubr.msk.f32.vlgmr.msra.gmra.mrb[4].mxu1 %vm152_vm2, %v552_v44 }
 0x7d4   :  { %989 = vmatmul.mubr.msk.f32.vlgmr.msra.gmra.mrb[8].mxu0 %vm351_vm3, %v558_v45  ;;  %1035 = vmatpush3.bf16.msra.mxu1 %v1159_v17 }
 0x7d5   :  { %1036 = vmatprep.subr.bf16.mxu1 %v1112_v16  ;;  %1006 = vmatprep.mubr.msk.f32.mxu1 %vm1113_vm1, %v1114_v18 }
 0x7d8   :  { %1038 = vmatpush3.bf16.msra.mxu1 %v1217_v57 }
 0x8a6   :  { %v724_v47 = vpop.f32.mrb[4].mxu1 }
 0x8a7   :  { %v728_v48 = vadd.f32 %v724_v47, %v124_v46  ;;  %v628_v49 = vpop.f32.mrb[8].mxu0  ;;  %v997_v50 = vpop.f32.mrb[5].mxu1 }
 0x8a8   :  { %v629_v51 = vadd.f32 %v1193_v29, %v628_v49  ;;  %v990_v52 = vpop.f32.mrb[9].mxu0 }
 0x8a9   :  { %1087 = vtanh.f32 %v728_v48  ;;  %v904_v16 = vmul.f32 -1.442695, %v728_v48 }
 0x8aa   :  { %1089 = vtanh.f32 %v629_v51  ;;  %v902_v18 = vmul.f32 -1.442695, %v629_v51 }
 0x8ab   :  { %1091 = vpow2.f32 %v904_v16 }
 0x8ac   :  { %1093 = vpow2.f32 %v902_v18 }
 0x8b3   :  { %v1088_v17 = vpop.eup %1087 }
 0x8b4   :  { %v1090_v53 = vpop.eup %1089  ;;  %738 = vrot.lane.b32.xlu1 %v1088_v17, %s1111_s17 }
 0x8b5   :  { %641 = vrot.lane.b32.xlu0 %v1090_v53, %s1111_s17  ;;  %v1092_v3 = vpop.eup %1091 }
 0x8b6   :  { %v1094_v54 = vpop.eup %1093  ;;  %v732_v55 = vadd.f32 1.0, %v1092_v3 }
 0x8b7   :  { %v635_v56 = vadd.f32 1.0, %v1094_v54 }
 0x8b8   :  { %1095 = vrcp.f32 %v732_v55 }
 0x8b9   :  { %1097 = vrcp.f32 %v635_v56 }
 0x8c2   :  { %v1096_v57 = vpop.eup %1095 }
 0x8c3   :  { %v1098_v59 = vpop.eup %1097  ;;  %v736_v63 = vmul.f32 %v1096_v57, %v543_v36 }
 0x8c4   :  { %v639_v1 = vmul.f32 %v1098_v59, %v446_v33 }
 0x926   :  { %v739_v58 = vpop.permute.xlu1 %738 }
 0x927   :  { %v741_v60 = vmul.f32 %v1096_v57, %v739_v58  ;;  %v642_v61 = vpop.permute.xlu0 %641 }
 0x928   :  { %v644_v62 = vmul.f32 %v1098_v59, %v642_v61 }
 0x929   :  { %743 = vrot.lane.b32.xlu1 %v741_v60, %s1116_s23 }
 0x92a   :  { %646 = vrot.lane.b32.xlu0 %v644_v62, %s1116_s23 }
 0x99b   :  { %v744_v0 = vpop.permute.xlu1 %743 }
 0x99c   :  { %v746_v2 = vadd.f32 %v744_v0, %v736_v63  ;;  %v647_v4 = vpop.permute.xlu0 %646 }
 0x99d   :  { %v649_v5 = vadd.f32 %v647_v4, %v639_v1 }
 0x99e   :  { %1099 = vtanh.f32 %v746_v2 }
 0x99f   :  { %1101 = vtanh.f32 %v649_v5 }
 0x9a8   :  { %v1100_v6 = vpop.eup %1099 }
 0x9a9   :  { %v1102_v7 = vpop.eup %1101  ;;  %749 = vrot.lane.b32.xlu1 %v1100_v6, %s1116_s23 }
 0x9aa   :  { %652 = vrot.lane.b32.xlu0 %v1102_v7, %s1116_s23 }
 0xa1b   :  { %v750_v8 = vpop.permute.xlu1 %749 }
 0xa1c   :  { %v752_v9 = vmul.f32 %v1096_v57, %v750_v8  ;;  %v653_v10 = vpop.permute.xlu0 %652 }
 0xa1d   :  { %v655_v11 = vmul.f32 %v1098_v59, %v653_v10 }
 0xa1e   :  { %754 = vrot.lane.b32.xlu0 %v752_v9, %s1117_s24 }
 0xa1f   :  { %758 = vrot.lane.b32.xlu1 %v655_v11, %s1118_s0 }
 0xa90   :  { %v755_v12 = vpop.permute.xlu0 %754 }
 0xa91   :  { %v759_v13 = vpop.permute.xlu1 %758 }
 0xa92   :  { %v761_v14 = vsel %vm152_vm2, %v755_v12, %v759_v13 }
 0xa93   :  { %1007 = vmatmul.mubr.msk.f32.vlgmr.msra.gmra.mrb[6].mxu1 %vm351_vm3, %v761_v14 }
 0xb66   :  { %v831_v15 = vpop.f32.mrb[6].mxu1 }
 0xb67   :  { %v832_v19 = vadd.f32 %v1193_v29, %v831_v15  ;;  %v1008_v20 = vpop.f32.mrb[7].mxu1 }
 0xb69   :  { %1103 = vtanh.f32 %v832_v19  ;;  %v906_v22 = vmul.f32 -1.442695, %v832_v19 }
 0xb6b   :  { %1105 = vpow2.f32 %v906_v22 }
 0xb73   :  { %v1104_v21 = vpop.eup %1103 }
 0xb74   :  { %844 = vrot.lane.b32.xlu0 %v1104_v21, %s1111_s17 }
 0xb75   :  { %v1106_v23 = vpop.eup %1105 }
 0xb76   :  { %v838_v24 = vadd.f32 1.0, %v1106_v23 }
 0xb78   :  { %1107 = vrcp.f32 %v838_v24 }
 0xb82   :  { %v1108_v25 = vpop.eup %1107 }
 0xb83   :  { %v842_v29 = vmul.f32 %v1108_v25, %v649_v5 }
 0xbe6   :  { %v845_v26 = vpop.permute.xlu0 %844 }
 0xbe7   :  { %v847_v27 = vmul.f32 %v1108_v25, %v845_v26 }
 0xbe9   :  { %849 = vrot.lane.b32.xlu1 %v847_v27, %s1116_s23 }
 0xbed   :  { %864 = vrot.lane.b32.xlu1 %v907_v28, %s1115_s22 }
 0xc5b   :  { %v850_v30 = vpop.permute.xlu1 %849 }
 0xc5c   :  { %v852_v31 = vadd.f32 %v850_v30, %v842_v29 }
 0xc5e   :  { %1109 = vtanh.f32 %v852_v31 }
 0xc5f   :  { %v865_v34 = vpop.permute.xlu1 %864 }
 0xc68   :  { %v1110_v32 = vpop.eup %1109 }
 0xc69   :  { %855 = vrot.lane.b32.xlu0 %v1110_v32, %s1116_s23 }
 0xcdb   :  { %v856_v33 = vpop.permute.xlu0 %855 }
 0xcdc   :  { %v858_v35 = vmul.f32 %v1108_v25, %v856_v33 }
 0xcde   :  { %v867_v36 = vmul.f32 %v865_v34, %v858_v35 }
 0xce0   :  { %869 = vrot.lane.b32.xlu0 %v867_v36, %s1117_s24 }
 0xd52   :  { %v870_v37 = vpop.permute.xlu0 %869 }
 0xd53   :  { %v872_v38 = vsel %vm152_vm2, %v870_v37, 0.0 }
 0xd54   :  { %873 = vadd.xlane.f32.xlu1 %v872_v38 }
 0xde1   :  { %v874_v39 = vpop.xlane.xlu1 %873 }
 0xde2   :  { %v875_v40 = vadd.f32 %v907_v28, %v874_v39 }
 0xde4   :  { %877 = vrot.lane.b32.xlu0 %v875_v40, %s1118_s0 }
 0xe56   :  { %v878_v41 = vpop.permute.xlu0 %877 }
 0xe57   :  { %881 = vst.msk [vmem:[%s1289_s2] sm:$0xff] %vm880_vm4, %v878_v41 }

</bundles_post_ra>
